<compile_context>
chip_gen: v7x
topology: tpu7x:2x2x1
jax: 0.10.0
libtpu: 0.0.40
codegen_flags: <defaults>
</compile_context>

<pallas_src>
import math

import jax
import jax.numpy as jnp
from jax.experimental import pallas as pl
from jax.experimental.pallas import tpu as pltpu

_LANE = 128
_BLOCK_BYTES = 4 * 1024 * 1024      # per-block target; 2 in + 2 out buffers ~= 16 MiB VMEM
_MIN_SPLIT_BYTES = 256 * 1024       # don't split blocks below this just for megacore
_MIN_GRID_BLOCKS = 4                # >= 2 blocks per TensorCore on v7x


def _cdiv(a, b):
    return -(-a // b)


def _round_down(x, m):
    return (x // m) * m


def _round_up(x, m):
    return _cdiv(x, m) * m


def _transpose_kernel(x_ref, o_ref):
    # x_ref: (Bb, tm, bt) ; o_ref: (Bb, bt, tm) -- last-two-dim transpose on-chip.
    # TODO(synk): for very small channel counts (C=4) the stores stay lane-sparse;
    # a lane-dense (Bb, bt*C) output needs a sublane->lane fold that Mosaic does not
    # reliably lower, so it is intentionally not attempted here.
    # TODO(synk): if profiling shows the 2-unit XLU binding on v7x for the M>512 path,
    # offload this tile transpose to the idle MXU via an identity matmul.
    o_ref[...] = jnp.swapaxes(x_ref[...], -1, -2)


def _batched_transpose(x3):
    """Pallas batched last-two-dim transpose: (B, M, T) -> (B, T, M)."""
    B, M, T = x3.shape
    itemsize = jnp.dtype(x3.dtype).itemsize

    # Middle axis: whole when small (typical EEG channel counts / NCHW C; full-dim
    # blocks are exempt from the (8,128) rule); 512-wide lane-dense tiles when large.
    tm = M if M <= 512 else 512

    # Time tile: scale with the block budget. Whole (possibly unaligned) T when it
    # fits -- no padding, no ragged block; otherwise 128-multiples with a ragged,
    # automatically masked last block.
    cols_budget = max(_LANE, _round_down(_BLOCK_BYTES // (tm * itemsize), _LANE))
    bt = T if T <= cols_budget else cols_budget

    # Fold batch rows into the block until it reaches the budget: this is a pure
    # data-movement kernel, so bigger blocks amortize the fixed per-step cost.
    tile_bytes = tm * bt * itemsize
    Bb = 1
    for d in range(B, 0, -1):
        if B % d == 0 and d * tile_bytes <= _BLOCK_BYTES:
            Bb = d
            break

    # Megacore: keep enough grid blocks for both v7x TensorCores, as long as the
    # resulting blocks stay big enough that step overhead remains negligible.
    def _nblocks(bb, tt):
        return (B // bb) * _cdiv(M, tm) * _cdiv(T, tt)

    while _nblocks(Bb, bt) < _MIN_GRID_BLOCKS:
        if Bb > 1:
            Bb = max(d for d in range(1, Bb) if B % d == 0)
            continue
        new_bt = _round_up(_cdiv(bt, 2), _LANE)
        if new_bt < bt and Bb * tm * new_bt * itemsize >= _MIN_SPLIT_BYTES:
            bt = new_bt
            continue
        break

    grid = (B // Bb, _cdiv(M, tm), _cdiv(T, bt))

    # TODO(synk): for sub-32-bit dtypes with tiny C, pltpu.bitcast-pack adjacent T
    # elements into 32-bit containers so the relayout/stores run at 32-bit granularity.
    return pl.pallas_call(
        _transpose_kernel,
        out_shape=jax.ShapeDtypeStruct((B, T, M), x3.dtype),
        grid=grid,
        in_specs=[pl.BlockSpec((Bb, tm, bt), lambda b, i, t: (b, i, t))],
        out_specs=pl.BlockSpec((Bb, bt, tm), lambda b, i, t: (b, t, i)),
        compiler_params=pltpu.CompilerParams(
            dimension_semantics=("parallel", "parallel", "parallel"),
            vmem_limit_bytes=32 * 1024 * 1024,
        ),
        cost_estimate=pl.CostEstimate(
            flops=0,
            transcendentals=0,
            bytes_accessed=2 * B * M * T * itemsize,
        ),
    )(x3)


def _compress_axes(shape, axes):
    """Merge input axes that stay adjacent and in-order in the output."""
    groups = [[axes[0]]]
    for a in axes[1:]:
        if a == groups[-1][-1] + 1:
            groups[-1].append(a)
        else:
            groups.append([a])
    in_order = sorted(groups, key=lambda g: g[0])
    in_shape = tuple(math.prod(shape[a] for a in g) for g in in_order)
    perm = tuple(in_order.index(g) for g in groups)
    return in_shape, perm


class Permute:
    """JAX/Pallas port of eegatscale.layers.Permute (no parameters)."""

    def __init__(self, *axes: int) -> None:
        self.axes = axes

    def __call__(self, x):
        ndim = x.ndim
        axes = tuple(a % ndim for a in self.axes)
        assert sorted(axes) == list(range(ndim)), "axes must be a permutation"
        out_shape = tuple(x.shape[a] for a in axes)

        in_g_shape, perm = _compress_axes(x.shape, axes)
        xg = x.reshape(in_g_shape)  # contiguous merge: metadata only, no data movement

        if perm == tuple(range(len(perm))):
            return x  # identity permutation (torch returns a view)
        if perm == (1, 0):  # pure 2-D transpose
            y = _batched_transpose(xg[None])[0]
        elif perm == (0, 2, 1):  # batched last-two-dim transpose
            y = _batched_transpose(xg)
        else:
            # TODO(synk): compressed permutations that are not a (batched) 2-D
            # transpose (e.g. (1, 0, 2)) need a multi-pass relayout kernel; fall
            # back to XLA's transpose to preserve the module semantics.
            y = jnp.transpose(xg, perm)
        return y.reshape(out_shape)


if __name__ == "__main__":
    key = jax.random.PRNGKey(0)
    k1, k2, k3, k4 = jax.random.split(key, 4)

    # Case 1: (B, C, T) EEG sequence, Permute(0, 2, 1) -> (B, T, C).
    x3 = jax.random.normal(k1, (2, 4, 16), dtype=jnp.float32)
    y3 = jax.block_until_ready(Permute(0, 2, 1)(x3))
    ref3 = jnp.transpose(x3, (0, 2, 1))
    assert y3.shape == ref3.shape and bool(jnp.array_equal(y3, ref3))

    # Case 2: NCHW image, Permute(0, 2, 3, 1) -> NHWC.
    x4 = jax.random.normal(k2, (2, 4, 16, 16), dtype=jnp.float32)
    y4 = jax.block_until_ready(Permute(0, 2, 3, 1)(x4))
    ref4 = jnp.transpose(x4, (0, 2, 3, 1))
    assert y4.shape == ref4.shape and bool(jnp.array_equal(y4, ref4))

    # Case 3: pure 2-D transpose, Permute(1, 0), non-multiple-of-128 minor axis.
    x2 = jax.random.normal(k3, (8, 40), dtype=jnp.float32)
    y2 = jax.block_until_ready(Permute(1, 0)(x2))
    ref2 = jnp.transpose(x2, (1, 0))
    assert y2.shape == ref2.shape and bool(jnp.array_equal(y2, ref2))

    # Case 4: EEG-like 22-channel input with T % 128 != 0 (now handled without
    # any wrapper-side pad / slice: whole-T full-dim block).
    x5 = jax.random.normal(k4, (2, 22, 200), dtype=jnp.float32)
    y5 = jax.block_until_ready(Permute(0, 2, 1)(x5))
    ref5 = jnp.transpose(x5, (0, 2, 1))
    assert y5.shape == ref5.shape and bool(jnp.array_equal(y5, ref5))

    print("KERNEL_OK")
</pallas_src>

<mosaic_0001>
module attributes {stable_mosaic.version = 11 : i64} {
  func.func @_transpose_kernel(%arg0: i32, %arg1: i32, %arg2: i32, %arg3: memref<1x4x16xf32, #tpu.memory_space<vmem>>, %arg4: memref<1x16x4xf32, #tpu.memory_space<vmem>>) attributes {dimension_semantics = [#tpu.dimension_semantics<parallel>, #tpu.dimension_semantics<parallel>, #tpu.dimension_semantics<parallel>], iteration_bounds = array<i64: 2, 1, 1>, scalar_prefetch = 0 : i64, scratch_operands = 0 : i64, tpu.core_type = #tpu.core_type<tc>, window_params = [{transform_indices = @transform_0, window_bounds = array<i64: 1, 4, 16>}, {transform_indices = @transform_1, window_bounds = array<i64: 1, 16, 4>}]} {
    %c0 = arith.constant 0 : index
    %c0_0 = arith.constant 0 : index
    %c0_1 = arith.constant 0 : index
    %0 = vector.load %arg3[%c0, %c0_0, %c0_1] : memref<1x4x16xf32, #tpu.memory_space<vmem>>, vector<1x4x16xf32>
    %1 = tpu.transpose %0, [0, 2, 1] : vector<1x4x16xf32> -> vector<1x16x4xf32>
    %c0_2 = arith.constant 0 : index
    %c0_3 = arith.constant 0 : index
    %c0_4 = arith.constant 0 : index
    %2 = vector.load %arg4[%c0_2, %c0_3, %c0_4] : memref<1x16x4xf32, #tpu.memory_space<vmem>>, vector<1x16x4xf32>
    tpu.vector_store %arg4[%c0_2, %c0_3, %c0_4], %1 {strides = array<i32>} : memref<1x16x4xf32, #tpu.memory_space<vmem>>, vector<1x16x4xf32>,
    return
  }
  func.func @transform_0(%arg0: i32, %arg1: i32, %arg2: i32) -> (i32, i32, i32) {
    %c0_i32 = arith.constant 0 : i32
    return %arg0, %arg1, %arg2 : i32, i32, i32
  }
  func.func @transform_1(%arg0: i32, %arg1: i32, %arg2: i32) -> (i32, i32, i32) {
    %c0_i32 = arith.constant 0 : i32
    return %arg0, %arg2, %arg1 : i32, i32, i32
  }
}

</mosaic_0001>

<bundles_post_ra>
// kernel: tpu_custom_call.1
= control target key start
LH: loop header
LB: loop body
LE: loop exit
PB: predicated region body
PF: predicated region fallthrough
CT: control target
= control target key end

     0   :  { %6 = vsyncpa [#allocation3], 0  ;;  %s608_s0 = inlined_call_operand.hbm [shape: f32[2,4,16], index: 0, kind: input, shape index: {}]   ;;  %s609_s1 = inlined_call_operand.vmem [shape: f32[2,16,4], index: 1, kind: output, shape index: {}]  }
   0x1   :  { %8 = vsyncpa [#allocation3 + $0x1], 0  ;;  %s483_s6 = smov 0   ;;  %s485_s7 = smov 0  }
   0x2   :  { %s487_s8 = smov 0   ;;  %s489_s9 = smov 0  }
   0x3   :  { %s491_s10 = smov 0   ;;  %s493_s11 = smov 0  }
   0x4 LB: > { %s321_s12 = sadd.s32 4294967295, %s470_s11   ;;  %s33_s13 = sadd.s32 1, %s466_s10  ;;  %s470_s11 = sphi %s493_s11, %s14_s11   ;;  %s466_s10 = sphi %s491_s10, %s619_s10   ;;  %s462_s9 = sphi %s489_s9, %s618_s9   ;;  %s458_s8 = sphi %s487_s8, %s617_s8   ;;  %s454_s7 = sphi %s485_s7, %s616_s7   ;;  %s450_s6 = sphi %s483_s6, %s615_s6  }
   0x5   : > { %p35_p0 = scmp.ge.s32.totalorder %s33_s13, 2  ;;  %s44_s14 = sadd.s32 1, %s458_s8 }
   0x6   : > { %p51_p1 = scmp.ne.s32.totalorder %s458_s8, %s454_s7  ;;  %p52_p2 = scmp.eq.s32.totalorder %s470_s11, 0 }
   0x7   : > { %s621_s13 = smov (%p35_p0, %s33_s13), 0  ;;  %p57_p4 = scmp.ne.s32.totalorder %s454_s7, %s450_s6 }
   0x8   : > { %p519_p3 = por %p52_p2, %p51_p1  ;;  %s37_s16 = ssub.s32 %s466_s10, %s621_s13 }
   0x9   : > { %p58_p5 = scmp.eq.s32.totalorder %s321_s12, 0  ;;  %p42_p6 = scmp.eq.s32.totalorder %s37_s16, 0 }
   0xa   : > { %p340_p8 = scmp.lt.s32.totalorder %s470_s11, 2  ;;  %s111_s19 = sand.u32 1, %s458_s8  }
   0xb   : > { %p526_p7 = por %p58_p5, %p57_p4  ;;  %s326_s20 = sshll.u32 %s466_s10, 6 }
   0xc   : > { %s532_s18 = scalar_select %p42_p6, %s458_s8, %s44_s14  }
   0xd   : > { %s325_s21 = sshll.u32 %s111_s19, 2  ;;  %s539_s24 = scalar_lea.hbm %s608_s0, %s326_s20 }
   0xe   : > { %s115_s25 = scalar_lea.vmem [#allocation2], %s325_s21  ;;  %p543_p9 = pnand %p340_p8, %p519_p3 }
   0xf   : > { %s124_s26 = sshll.u32 %s115_s25, 4  ;;  %s112_s28 = scalar_lea.sflag [#allocation3], %s111_s19  ;;  %s547_s26 = int_to_ptr.vmem [resolvable:$true] %s124_s26 }
  0x10   : > { %s390_s29 = scalar_lea.hbm %s539_s24, 64  ;;  %p392_p13 = pneg %p543_p9 }
  0x11   : > { %p391_p12 = scmp.ne.s32.totalorder %s539_s24, %s390_s29  ;;  %s395_s3 = scalar_lea.hbm %s608_s0, 128 }
  0x12   : > { %p396_p2 = scmp.lt.u32.totalorder %s539_s24, %s608_s0  ;;  %p397_p3 = scmp.lt.u32.totalorder %s395_s3, %s390_s29 }
  0x13   : > { %p393_p0 = pnand %p392_p13, %p391_p12  ;;  %p399_p5 = scmp.lt.u32.totalorder %s390_s29, %s539_s24 }
  0x14   : > { %p398_p4 = por %p397_p3, %p396_p2 }
  0x15   : > { %p394_p1 = pneg %p393_p0 }
  0x16   : > { %p400_p6 = por %p399_p5, %p398_p4 }
  0x18   : > { %p401_p8 = pnand %p400_p6, %p394_p1 }
  0x1a   : > { %404 = shalt.err (!%p401_p8)
}
  0x1b   : > { %s405_s6 = scalar_lea.vmem %s547_s26, 64  ;;  %s472_s12 = smov [#allocation2]  }
  0x1c   : > { %p406_p12 = scmp.ne.s32.totalorder %s547_s26, %s405_s6  ;;  %s410_s14 = sshll.u32 %s472_s12, 4  ;;  %s411_s14 = int_to_ptr.vmem [resolvable:$false] %s410_s14 }
  0x1d   : > { %s412_s15 = scalar_lea.vmem %s411_s14, 128  ;;  %p413_p11 = scmp.lt.s32.totalorder %s547_s26, %s411_s14 }
  0x1e   : > { %p408_p0 = pnand %p406_p12, %p392_p13  ;;  %p414_p2 = scmp.lt.s32.totalorder %s412_s15, %s405_s6 }
  0x20   : > { %p409_p10 = pneg %p408_p0  ;;  %p415_p3 = por %p414_p2, %p413_p11 }
  0x22   : > { %p416_p4 = pnand %p415_p3, %p409_p10 }
  0x24   : > { %419 = shalt.err (!%p416_p4)
}
  0x25   : > { %339 = dma.hbm_to_vmem [thread:$0]  (!%p543_p9), %s539_s24, 64, %s547_s26, %s112_s28  }
  0x26   : > { %p613_p1 = scmp.lt.s32.totalorder %s470_s11, 3  ;;  %p614_p5 = scmp.ge.s32.totalorder %s470_s11, 1 }
  0x28   : > { %p130_p13 = pnand %p614_p5, %p613_p1 }
  0x29   : > { %s135_s16 = sand.u32 (!%p130_p13), 1, %s454_s7  }
  0x2a   : > { %133 = sbr.rel (%p130_p13) target bundleno = 185 (0xb9), region = 24  ;;  %s328_s19 = sshll.u32 (!%p130_p13), %s135_s16, 2 }
  0x2b   : > { %s136_s20 = scalar_lea.sflag (!%p130_p13), [#allocation3], %s135_s16  ;;  %s139_s21 = scalar_lea.vmem (!%p130_p13), [#allocation2], %s328_s19 }
  0x31   : > { %445 = dma.done.wait (%p526_p7), %s136_s20, 64  }
  0x32   : > { %447 = vsyncadd (%p526_p7), %s136_s20, 4294967232  ;;  %v178_v0 = vld [vmem:[%s139_s21] sm:$0xf]  ;;  %p166_p9 = scmp.lt.s32.totalorder %s462_s9, 1  ;;  %vm211_vm0 = vcmask 31744  }
  0x33   : > { %179 = vxpose.xlu0.b32.start.end [1/1] (short) (narrow) %v178_v0, 16 }
  0x34   : > { %s623_s9 = smov (!%p166_p9, %s462_s9), 1 }
  0x35   : > { %s333_s22 = sshll.u32 %s623_s9, 4 }
  0x36   : > { %s176_s25 = scalar_lea.vmem %s609_s1, %s333_s22 }
  0xb3   : > { %v195_v1 = vpop.trf.xlu0 }
  0xb4   : > { %212 = vst.msk [vmem:[%s176_s25] sm:$0xff] %vm211_vm0, %v195_v1 }
  0xb7   : > { %v196_v2 = vpop.trf.xlu0 }
  0xb8   : > { %213 = vst.msk [vmem:[%s176_s25 + $0x8] sm:$0xff] %vm211_vm0, %v196_v2 }
  0xb9 PF: > { %s14_s11 = sadd.s32 1, %s470_s11   ;;  %s615_s6 = smov %s454_s7 }
  0xba   : > { %p11_p7 = scmp.ge.s32.totalorder %s14_s11, 4   ;;  %s616_s7 = smov %s458_s8 }
  0xbb   : > { %s617_s8 = smov %s532_s18  ;;  %s618_s9 = smov %s466_s10 }
  0xbc   : > { %s619_s10 = smov %s621_s13  ;;  %13 = sbr.rel (!%p11_p7) target bundleno = 4 (0x4), region = 64 }
  0xc3   :  { %250 = vsyncpa [#allocation3], 1 }
  0xc4   :  { %252 = vsyncpa [#allocation3 + $0x1], 1 }

</bundles_post_ra>
